<compile_context>
chip_gen: v6e
topology: v6e:2x2x1
jax: 0.10.0
libtpu: 0.0.40
codegen_flags: <defaults>
</compile_context>

<pallas_src>
import functools

import jax
import jax.numpy as jnp
from jax.experimental import pallas as pl
from jax.experimental.pallas import tpu as pltpu

LOG_STD_MAX = 2.0
LOG_STD_MIN = -5.0

HIDDEN = 256
HEAD_PAD = 128      # lane-dense fused-head output width
LOGSTD_OFF = 64     # log_std columns start here; mean occupies [0, act_dim)


def _round_up(n, m):
    return ((n + m - 1) // m) * m


def _supports_bf16_elementwise():
    """bf16 VPU exists on v6e / v7x; keep f32 elementwise on v5e and older."""
    try:
        kind = jax.devices()[0].device_kind.lower()
    except Exception:
        return False
    return ("v6" in kind) or ("v7" in kind)


def _actor_kernel(x_ref,
                  w1_ref, b1_ref,
                  w2_ref, b2_ref,
                  w3_ref, b3_ref,
                  wh_ref, bh_ref,
                  out_ref,
                  *, bf16_elementwise):
    """Backbone (3 x Linear+ReLU) + fused [mean | log_std] head, one tile."""

    def layer(a_bf16, w_ref, b_ref):
        # bf16 operands into the MXU, f32 accumulation.
        h = jnp.dot(a_bf16, w_ref[...], preferred_element_type=jnp.float32)
        if bf16_elementwise:
            # bf16 VALU path (v6e/v7x): cast once, bias-add + ReLU in bf16.
            h = jnp.maximum(h.astype(jnp.bfloat16) + b_ref[...], 0.0)
        else:
            # f32 VALU path (v5e): bias-add + ReLU in f32, cast for next dot.
            h = jnp.maximum(h + b_ref[...], 0.0).astype(jnp.bfloat16)
        return h

    h = layer(x_ref[...], w1_ref, b1_ref)
    h = layer(h, w2_ref, b2_ref)
    h = layer(h, w3_ref, b3_ref)

    # Fused, 128-lane-padded head: [mean | pad | log_std | pad].  Head math
    # (bias add, tanh, affine remap) stays in f32.
    heads = jnp.dot(h, wh_ref[...],
                    preferred_element_type=jnp.float32) + bh_ref[...]

    col = jax.lax.broadcasted_iota(jnp.int32, heads.shape, 1)
    squashed = (LOG_STD_MIN
                + 0.5 * (LOG_STD_MAX - LOG_STD_MIN) * (jnp.tanh(heads) + 1.0))
    out_ref[...] = jnp.where(col >= LOGSTD_OFF, squashed, heads).astype(out_ref.dtype)


def actor_forward(x, params, *, bf16_elementwise=None):
    """Fused Actor.forward.  Returns (mean, log_std), both f32, shape [B, act_dim]."""
    if bf16_elementwise is None:
        bf16_elementwise = _supports_bf16_elementwise()

    B, obs_dim = x.shape
    act_dim = params["act_dim"]

    # Tile selection: single grid step up to 512 rows (per-step overhead
    # dominates this kernel), 512-row tiles (multiple of 256) above that.
    if B <= 512:
        TB = _round_up(max(B, 1), 8)
        Bp = TB
    else:
        TB = 512
        Bp = _round_up(B, TB)
    ntiles = Bp // TB

    x = x.astype(jnp.bfloat16)           # cast once: half the input DMA bytes
    if Bp != B:
        x = jnp.pad(x, ((0, Bp - B), (0, 0)))

    bias_dtype = jnp.bfloat16 if bf16_elementwise else jnp.float32
    b1 = params["b1"].astype(bias_dtype)
    b2 = params["b2"].astype(bias_dtype)
    b3 = params["b3"].astype(bias_dtype)
    bh = params["bh"]                    # head bias stays f32

    const = lambda shape: pl.BlockSpec(shape, lambda i: (0, 0))  # fetched once
    in_specs = [
        pl.BlockSpec((TB, obs_dim), lambda i: (i, 0)),
        const((obs_dim, HIDDEN)), const((1, HIDDEN)),
        const((HIDDEN, HIDDEN)), const((1, HIDDEN)),
        const((HIDDEN, HIDDEN)), const((1, HIDDEN)),
        const((HIDDEN, HEAD_PAD)), const((1, HEAD_PAD)),
    ]
    out_specs = pl.BlockSpec((TB, HEAD_PAD), lambda i: (i, 0))

    flops = 2 * Bp * (obs_dim * HIDDEN + 2 * HIDDEN * HIDDEN + HIDDEN * HEAD_PAD)
    bytes_accessed = (
        Bp * obs_dim * 2                                   # x (bf16)
        + (obs_dim * HIDDEN + 2 * HIDDEN * HIDDEN + HIDDEN * HEAD_PAD) * 2  # weights
        + 3 * HIDDEN * 4 + HEAD_PAD * 4                    # biases
        + Bp * HEAD_PAD * 4                                # output
    )
    cost = pl.CostEstimate(flops=flops,
                           transcendentals=Bp * HEAD_PAD,
                           bytes_accessed=bytes_accessed)

    kernel = functools.partial(_actor_kernel, bf16_elementwise=bf16_elementwise)

    out = pl.pallas_call(
        kernel,
        out_shape=jax.ShapeDtypeStruct((Bp, HEAD_PAD), jnp.float32),
        grid=(ntiles,),
        in_specs=in_specs,
        out_specs=out_specs,
        compiler_params=pltpu.CompilerParams(
            dimension_semantics=("parallel",)),
        cost_estimate=cost,
    )(
        x,
        params["w1"], b1,
        params["w2"], b2,
        params["w3"], b3,
        params["wh"], bh,
    )

    mean = out[:B, :act_dim]
    log_std = out[:B, LOGSTD_OFF:LOGSTD_OFF + act_dim]
    return mean, log_std


def init_params(key, obs_dim, act_dim):
    """PyTorch-Linear-style uniform init.  Weights stored [in, out] in bf16,
    the two heads packed into one zero-padded [HIDDEN, 128] matrix
    (mean -> cols [0, act_dim), log_std -> cols [64, 64+act_dim))."""
    assert act_dim <= LOGSTD_OFF, "act_dim must be <= 64 for the padded head layout"

    def linear(k, fan_in, fan_out):
        kw, kb = jax.random.split(k)
        bound = 1.0 / jnp.sqrt(fan_in)
        w = jax.random.uniform(kw, (fan_in, fan_out), jnp.float32, -bound, bound)
        b = jax.random.uniform(kb, (1, fan_out), jnp.float32, -bound, bound)
        return w, b

    ks = jax.random.split(key, 5)
    w1, b1 = linear(ks[0], obs_dim, HIDDEN)
    w2, b2 = linear(ks[1], HIDDEN, HIDDEN)
    w3, b3 = linear(ks[2], HIDDEN, HIDDEN)
    wm, bm = linear(ks[3], HIDDEN, act_dim)
    wl, bl = linear(ks[4], HIDDEN, act_dim)

    wh = jnp.zeros((HIDDEN, HEAD_PAD), jnp.float32)
    wh = wh.at[:, :act_dim].set(wm)
    wh = wh.at[:, LOGSTD_OFF:LOGSTD_OFF + act_dim].set(wl)
    bh = jnp.zeros((1, HEAD_PAD), jnp.float32)
    bh = bh.at[:, :act_dim].set(bm)
    bh = bh.at[:, LOGSTD_OFF:LOGSTD_OFF + act_dim].set(bl)

    bf = lambda a: a.astype(jnp.bfloat16)
    return dict(w1=bf(w1), b1=b1, w2=bf(w2), b2=b2, w3=bf(w3), b3=b3,
                wh=bf(wh), bh=bh, act_dim=act_dim)


def actor_forward_ref(x, p, *, bf16_elementwise=None):
    """Pure-JAX reference mirroring the kernel's numerics exactly."""
    if bf16_elementwise is None:
        bf16_elementwise = _supports_bf16_elementwise()
    act_dim = p["act_dim"]

    def layer(a_bf16, w, b):
        h = jnp.dot(a_bf16, w, preferred_element_type=jnp.float32)
        if bf16_elementwise:
            h = jnp.maximum(h.astype(jnp.bfloat16) + b.astype(jnp.bfloat16), 0.0)
        else:
            h = jnp.maximum(h + b, 0.0).astype(jnp.bfloat16)
        return h

    h = layer(x.astype(jnp.bfloat16), p["w1"], p["b1"])
    h = layer(h, p["w2"], p["b2"])
    h = layer(h, p["w3"], p["b3"])
    heads = jnp.dot(h, p["wh"], preferred_element_type=jnp.float32) + p["bh"]

    mean = heads[:, :act_dim]
    log_std = jnp.tanh(heads[:, LOGSTD_OFF:LOGSTD_OFF + act_dim])
    log_std = LOG_STD_MIN + 0.5 * (LOG_STD_MAX - LOG_STD_MIN) * (log_std + 1.0)
    return mean, log_std


if __name__ == "__main__":
    key = jax.random.PRNGKey(0)
    k_obs, k_par, k_big = jax.random.split(key, 3)

    B, obs_dim, act_dim = 8, 32, 8   # small SAC-ManiSkill-like shapes
    x = jax.random.normal(k_obs, (B, obs_dim), jnp.float32)
    params = init_params(k_par, obs_dim, act_dim)

    mean, log_std = actor_forward(x, params)
    jax.block_until_ready((mean, log_std))

    mean_ref, log_std_ref = actor_forward_ref(x, params)
    assert mean.shape == (B, act_dim) and log_std.shape == (B, act_dim)
    assert jnp.allclose(mean, mean_ref, atol=2e-3, rtol=2e-3)
    assert jnp.allclose(log_std, log_std_ref, atol=2e-3, rtol=2e-3)

    # Multi-tile path: B=600 -> two 512-row tiles (batch axis "parallel").
    Bb = 600
    xb = jax.random.normal(k_big, (Bb, obs_dim), jnp.float32)
    mb, lb = actor_forward(xb, params)
    jax.block_until_ready((mb, lb))
    mbr, lbr = actor_forward_ref(xb, params)
    assert mb.shape == (Bb, act_dim) and lb.shape == (Bb, act_dim)
    assert jnp.allclose(mb, mbr, atol=2e-3, rtol=2e-3)
    assert jnp.allclose(lb, lbr, atol=2e-3, rtol=2e-3)

    print("KERNEL_OK")
</pallas_src>

<mosaic_0001>
module attributes {stable_mosaic.version = 11 : i64} {
  func.func @_actor_kernel(%arg0: i32, %arg1: memref<8x32xbf16, #tpu.memory_space<vmem>>, %arg2: memref<32x256xbf16, #tpu.memory_space<vmem>>, %arg3: memref<1x256xf32, #tpu.memory_space<vmem>>, %arg4: memref<256x256xbf16, #tpu.memory_space<vmem>>, %arg5: memref<1x256xf32, #tpu.memory_space<vmem>>, %arg6: memref<256x256xbf16, #tpu.memory_space<vmem>>, %arg7: memref<1x256xf32, #tpu.memory_space<vmem>>, %arg8: memref<256x128xbf16, #tpu.memory_space<vmem>>, %arg9: memref<1x128xf32, #tpu.memory_space<vmem>>, %arg10: memref<8x128xf32, #tpu.memory_space<vmem>>) attributes {dimension_semantics = [#tpu.dimension_semantics<parallel>], iteration_bounds = array<i64: 1>, scalar_prefetch = 0 : i64, scratch_operands = 0 : i64, tpu.core_type = #tpu.core_type<tc>, window_params = [{transform_indices = @transform_0, window_bounds = array<i64: 8, 32>}, {pipeline_mode = #tpu.pipeline_mode<synchronous>, transform_indices = @transform_1, window_bounds = array<i64: 32, 256>}, {pipeline_mode = #tpu.pipeline_mode<synchronous>, transform_indices = @transform_2, window_bounds = array<i64: 1, 256>}, {pipeline_mode = #tpu.pipeline_mode<synchronous>, transform_indices = @transform_3, window_bounds = array<i64: 256, 256>}, {pipeline_mode = #tpu.pipeline_mode<synchronous>, transform_indices = @transform_4, window_bounds = array<i64: 1, 256>}, {pipeline_mode = #tpu.pipeline_mode<synchronous>, transform_indices = @transform_5, window_bounds = array<i64: 256, 256>}, {pipeline_mode = #tpu.pipeline_mode<synchronous>, transform_indices = @transform_6, window_bounds = array<i64: 1, 256>}, {pipeline_mode = #tpu.pipeline_mode<synchronous>, transform_indices = @transform_7, window_bounds = array<i64: 256, 128>}, {pipeline_mode = #tpu.pipeline_mode<synchronous>, transform_indices = @transform_8, window_bounds = array<i64: 1, 128>}, {transform_indices = @transform_9, window_bounds = array<i64: 8, 128>}]} {
    %c0 = arith.constant 0 : index
    %c0_0 = arith.constant 0 : index
    %0 = vector.load %arg1[%c0, %c0_0] : memref<8x32xbf16, #tpu.memory_space<vmem>>, vector<8x32xbf16>
    %c0_1 = arith.constant 0 : index
    %c0_2 = arith.constant 0 : index
    %1 = vector.load %arg2[%c0_1, %c0_2] : memref<32x256xbf16, #tpu.memory_space<vmem>>, vector<32x256xbf16>
    %cst = arith.constant dense<0.000000e+00> : vector<8x256xf32>
    %2 = tpu.matmul %0, %1, %cst {dimension_numbers = #tpu.dot_dimension_numbers<[1], [0], [0], [1], [0, 0, 1, 1], [], []>} : vector<8x32xbf16>, vector<32x256xbf16>, vector<8x256xf32> -> vector<8x256xf32>
    %c0_3 = arith.constant 0 : index
    %c0_4 = arith.constant 0 : index
    %3 = vector.load %arg3[%c0_3, %c0_4] : memref<1x256xf32, #tpu.memory_space<vmem>>, vector<1x256xf32>
    %4 = vector.broadcast %3 : vector<1x256xf32> to vector<8x256xf32>
    %5 = arith.addf %2, %4 : vector<8x256xf32>
    %cst_5 = arith.constant 0.000000e+00 : f32
    %6 = vector.broadcast %cst_5 : f32 to vector<8x256xf32>
    %7 = arith.maximumf %5, %6 : vector<8x256xf32>
    %8 = arith.truncf %7 : vector<8x256xf32> to vector<8x256xbf16>
    %c0_6 = arith.constant 0 : index
    %c0_7 = arith.constant 0 : index
    %9 = vector.load %arg4[%c0_6, %c0_7] : memref<256x256xbf16, #tpu.memory_space<vmem>>, vector<256x256xbf16>
    %cst_8 = arith.constant dense<0.000000e+00> : vector<8x256xf32>
    %10 = tpu.matmul %8, %9, %cst_8 {dimension_numbers = #tpu.dot_dimension_numbers<[1], [0], [0], [1], [0, 0, 1, 1], [], []>} : vector<8x256xbf16>, vector<256x256xbf16>, vector<8x256xf32> -> vector<8x256xf32>
    %c0_9 = arith.constant 0 : index
    %c0_10 = arith.constant 0 : index
    %11 = vector.load %arg5[%c0_9, %c0_10] : memref<1x256xf32, #tpu.memory_space<vmem>>, vector<1x256xf32>
    %12 = vector.broadcast %11 : vector<1x256xf32> to vector<8x256xf32>
    %13 = arith.addf %10, %12 : vector<8x256xf32>
    %cst_11 = arith.constant 0.000000e+00 : f32
    %14 = vector.broadcast %cst_11 : f32 to vector<8x256xf32>
    %15 = arith.maximumf %13, %14 : vector<8x256xf32>
    %16 = arith.truncf %15 : vector<8x256xf32> to vector<8x256xbf16>
    %c0_12 = arith.constant 0 : index
    %c0_13 = arith.constant 0 : index
    %17 = vector.load %arg6[%c0_12, %c0_13] : memref<256x256xbf16, #tpu.memory_space<vmem>>, vector<256x256xbf16>
    %cst_14 = arith.constant dense<0.000000e+00> : vector<8x256xf32>
    %18 = tpu.matmul %16, %17, %cst_14 {dimension_numbers = #tpu.dot_dimension_numbers<[1], [0], [0], [1], [0, 0, 1, 1], [], []>} : vector<8x256xbf16>, vector<256x256xbf16>, vector<8x256xf32> -> vector<8x256xf32>
    %c0_15 = arith.constant 0 : index
    %c0_16 = arith.constant 0 : index
    %19 = vector.load %arg7[%c0_15, %c0_16] : memref<1x256xf32, #tpu.memory_space<vmem>>, vector<1x256xf32>
    %20 = vector.broadcast %19 : vector<1x256xf32> to vector<8x256xf32>
    %21 = arith.addf %18, %20 : vector<8x256xf32>
    %cst_17 = arith.constant 0.000000e+00 : f32
    %22 = vector.broadcast %cst_17 : f32 to vector<8x256xf32>
    %23 = arith.maximumf %21, %22 : vector<8x256xf32>
    %24 = arith.truncf %23 : vector<8x256xf32> to vector<8x256xbf16>
    %c0_18 = arith.constant 0 : index
    %c0_19 = arith.constant 0 : index
    %25 = vector.load %arg8[%c0_18, %c0_19] : memref<256x128xbf16, #tpu.memory_space<vmem>>, vector<256x128xbf16>
    %cst_20 = arith.constant dense<0.000000e+00> : vector<8x128xf32>
    %26 = tpu.matmul %24, %25, %cst_20 {dimension_numbers = #tpu.dot_dimension_numbers<[1], [0], [0], [1], [0, 0, 1, 1], [], []>} : vector<8x256xbf16>, vector<256x128xbf16>, vector<8x128xf32> -> vector<8x128xf32>
    %c0_21 = arith.constant 0 : index
    %c0_22 = arith.constant 0 : index
    %27 = vector.load %arg9[%c0_21, %c0_22] : memref<1x128xf32, #tpu.memory_space<vmem>>, vector<1x128xf32>
    %28 = vector.broadcast %27 : vector<1x128xf32> to vector<8x128xf32>
    %29 = arith.addf %26, %28 : vector<8x128xf32>
    %30 = tpu.iota {dimensions = array<i32: 1>} : vector<8x128xi32>
    %31 = math.tanh %29 : vector<8x128xf32>
    %cst_23 = arith.constant 1.000000e+00 : f32
    %32 = vector.broadcast %cst_23 : f32 to vector<8x128xf32>
    %33 = arith.addf %31, %32 : vector<8x128xf32>
    %cst_24 = arith.constant 3.500000e+00 : f32
    %34 = vector.broadcast %cst_24 : f32 to vector<8x128xf32>
    %35 = arith.mulf %34, %33 : vector<8x128xf32>
    %cst_25 = arith.constant -5.000000e+00 : f32
    %36 = vector.broadcast %cst_25 : f32 to vector<8x128xf32>
    %37 = arith.addf %36, %35 : vector<8x128xf32>
    %c64_i32 = arith.constant 64 : i32
    %38 = vector.broadcast %c64_i32 : i32 to vector<8x128xi32>
    %39 = arith.cmpi sge, %30, %38 : vector<8x128xi32>
    %40 = arith.select %39, %37, %29 : vector<8x128xi1>, vector<8x128xf32>
    %c0_26 = arith.constant 0 : index
    %c0_27 = arith.constant 0 : index
    %41 = vector.load %arg10[%c0_26, %c0_27] : memref<8x128xf32, #tpu.memory_space<vmem>>, vector<8x128xf32>
    tpu.vector_store %arg10[%c0_26, %c0_27], %40 {strides = array<i32>} : memref<8x128xf32, #tpu.memory_space<vmem>>, vector<8x128xf32>,
    return
  }
  func.func @transform_0(%arg0: i32) -> (i32, i32) {
    %c0_i32 = arith.constant 0 : i32
    %c0_i32_0 = arith.constant 0 : i32
    return %arg0, %c0_i32 : i32, i32
  }
  func.func @transform_1(%arg0: i32) -> (i32, i32) {
    %c0_i32 = arith.constant 0 : i32
    %c0_i32_0 = arith.constant 0 : i32
    %c0_i32_1 = arith.constant 0 : i32
    return %c0_i32, %c0_i32_0 : i32, i32
  }
  func.func @transform_2(%arg0: i32) -> (i32, i32) {
    %c0_i32 = arith.constant 0 : i32
    %c0_i32_0 = arith.constant 0 : i32
    %c0_i32_1 = arith.constant 0 : i32
    return %c0_i32, %c0_i32_0 : i32, i32
  }
  func.func @transform_3(%arg0: i32) -> (i32, i32) {
    %c0_i32 = arith.constant 0 : i32
    %c0_i32_0 = arith.constant 0 : i32
    %c0_i32_1 = arith.constant 0 : i32
    return %c0_i32, %c0_i32_0 : i32, i32
  }
  func.func @transform_4(%arg0: i32) -> (i32, i32) {
    %c0_i32 = arith.constant 0 : i32
    %c0_i32_0 = arith.constant 0 : i32
    %c0_i32_1 = arith.constant 0 : i32
    return %c0_i32, %c0_i32_0 : i32, i32
  }
  func.func @transform_5(%arg0: i32) -> (i32, i32) {
    %c0_i32 = arith.constant 0 : i32
    %c0_i32_0 = arith.constant 0 : i32
    %c0_i32_1 = arith.constant 0 : i32
    return %c0_i32, %c0_i32_0 : i32, i32
  }
  func.func @transform_6(%arg0: i32) -> (i32, i32) {
    %c0_i32 = arith.constant 0 : i32
    %c0_i32_0 = arith.constant 0 : i32
    %c0_i32_1 = arith.constant 0 : i32
    return %c0_i32, %c0_i32_0 : i32, i32
  }
  func.func @transform_7(%arg0: i32) -> (i32, i32) {
    %c0_i32 = arith.constant 0 : i32
    %c0_i32_0 = arith.constant 0 : i32
    %c0_i32_1 = arith.constant 0 : i32
    return %c0_i32, %c0_i32_0 : i32, i32
  }
  func.func @transform_8(%arg0: i32) -> (i32, i32) {
    %c0_i32 = arith.constant 0 : i32
    %c0_i32_0 = arith.constant 0 : i32
    %c0_i32_1 = arith.constant 0 : i32
    return %c0_i32, %c0_i32_0 : i32, i32
  }
  func.func @transform_9(%arg0: i32) -> (i32, i32) {
    %c0_i32 = arith.constant 0 : i32
    %c0_i32_0 = arith.constant 0 : i32
    return %arg0, %c0_i32 : i32, i32
  }
}

</mosaic_0001>

<bundles_post_ra>
// kernel: tpu_custom_call.1
= control target key start
LH: loop header
LB: loop body
LE: loop exit
PB: predicated region body
PF: predicated region fallthrough
CT: control target
= control target key end

     0   :  { %14 = vsyncpa [#allocation3], 0  ;;  %s1364_s0 = inlined_call_operand.hbm [shape: bf16[8,32], index: 0, kind: input, shape index: {}]   ;;  %s1365_s1 = inlined_call_operand.hbm [shape: bf16[32,256], index: 1, kind: input, shape index: {}]   ;;  %s1366_s2 = inlined_call_operand.vmem [shape: f32[1,256], index: 2, kind: input, shape index: {}]   ;;  %s1367_s3 = inlined_call_operand.hbm [shape: bf16[256,256], index: 3, kind: input, shape index: {}]   ;;  %s1368_s4 = inlined_call_operand.vmem [shape: f32[1,256], index: 4, kind: input, shape index: {}]   ;;  %s1369_s5 = inlined_call_operand.hbm [shape: bf16[256,256], index: 5, kind: input, shape index: {}]   ;;  %s1370_s6 = inlined_call_operand.vmem [shape: f32[1,256], index: 6, kind: input, shape index: {}]   ;;  %s1371_s7 = inlined_call_operand.hbm [shape: bf16[256,128], index: 7, kind: input, shape index: {}]   ;;  %s1372_s8 = inlined_call_operand.vmem [shape: f32[1,128], index: 8, kind: input, shape index: {}]   ;;  %s1373_s9 = inlined_call_operand.hbm [shape: f32[8,128], index: 9, kind: output, shape index: {}]  }
   0x1   :  { %15 = vsyncpa [#allocation6], 0 }
   0x2   :  { %16 = vsyncpa [#allocation9], 0 }
   0x3   :  { %17 = vsyncpa [#allocation4], 0  ;;  %s1252_s30 = smov [#allocation5]  }
   0x4   :  { %s33_s10 = sshll.u32 %s1252_s30, 4  ;;  %s34_s10 = int_to_ptr.vmem [resolvable:$true] %s33_s10 }
   0x5   :  { %s1132_s11 = scalar_lea.vmem %s34_s10, 512  ;;  %p1137_p1 = scmp.lt.s32.totalorder %s34_s10, %s34_s10 }
   0x6   :  { %p1133_p0 = scmp.ne.s32.totalorder %s34_s10, %s1132_s11  ;;  %p1138_p2 = scmp.lt.s32.totalorder %s1132_s11, %s1132_s11 }
   0x8   :  { %p1139_p3 = por %p1138_p2, %p1137_p1 }
   0xa   :  { %p1140_p4 = pnand %p1139_p3, %p1133_p0 }
   0xc   :  { %1143 = shalt.err (!%p1140_p4)
}
   0xd   :  { %s1253_s12 = smov 128   ;;  %s1254_s13 = smov 8  }
   0xe   :  { %39 = dma.hbm_to_vmem [thread:$0]  %s1365_s1, 512, %s34_s10, [#allocation6], %s1253_s12, %s1253_s12, %s1254_s13  }
   0xf   :  { %s1255_s16 = smov [#allocation8]   ;;  %s1256_s18 = smov [#allocation2]  }
  0x10   :  { %s61_s17 = sshll.u32 %s1255_s16, 4  ;;  %s24_s19 = sshll.u32 %s1256_s18, 4  ;;  %s62_s17 = int_to_ptr.vmem [resolvable:$true] %s61_s17  ;;  %s25_s19 = int_to_ptr.vmem [resolvable:$true] %s24_s19 }
  0x11   :  { %s1152_s20 = scalar_lea.vmem %s62_s17, 4096  ;;  %p1157_p6 = scmp.lt.s32.totalorder %s62_s17, %s62_s17 }
  0x12   :  { %p1153_p5 = scmp.ne.s32.totalorder %s62_s17, %s1152_s20  ;;  %p1158_p7 = scmp.lt.s32.totalorder %s1152_s20, %s1152_s20 }
  0x14   :  { %p1159_p8 = por %p1158_p7, %p1157_p6 }
  0x16   :  { %p1160_p9 = pnand %p1159_p8, %p1153_p5 }
  0x18   :  { %1163 = shalt.err (!%p1160_p9)
}
  0x19   :  { %67 = dma.hbm_to_vmem [thread:$0]  %s1369_s5, 4096, %s62_s17, [#allocation9], %s1253_s12, %s1253_s12, %s1254_s13  }
  0x1a   :  { %s1172_s1 = scalar_lea.vmem %s25_s19, 64  ;;  %p1177_p11 = scmp.lt.s32.totalorder %s25_s19, %s25_s19 }
  0x1b   :  { %p1173_p10 = scmp.ne.s32.totalorder %s25_s19, %s1172_s1  ;;  %p1178_p12 = scmp.lt.s32.totalorder %s1172_s1, %s1172_s1 }
  0x1d   :  { %p1179_p13 = por %p1178_p12, %p1177_p11 }
  0x1f   :  { %p1180_p0 = pnand %p1179_p13, %p1173_p10 }
  0x21   :  { %1183 = shalt.err (!%p1180_p0)
}
  0x22   :  { %27 = dma.hbm_to_vmem [thread:$0]  %s1364_s0, 64, %s25_s19, [#allocation3]  }
  0x23   :  { %s1257_s25 = smov [#allocation7]   ;;  %s1258_s27 = smov [#allocation10]  }
  0x24   :  { %s47_s26 = sshll.u32 %s1257_s25, 4  ;;  %s75_s28 = sshll.u32 %s1258_s27, 4  ;;  %s48_s26 = int_to_ptr.vmem [resolvable:$true] %s47_s26  ;;  %s76_s28 = int_to_ptr.vmem [resolvable:$true] %s75_s28 }
  0x25   :  { %s1192_s29 = scalar_lea.vmem %s48_s26, 4096  ;;  %p1197_p2 = scmp.lt.s32.totalorder %s48_s26, %s48_s26 }
  0x26   :  { %p1193_p1 = scmp.ne.s32.totalorder %s48_s26, %s1192_s29  ;;  %p1198_p3 = scmp.lt.s32.totalorder %s1192_s29, %s1192_s29 }
  0x28   :  { %p1199_p4 = por %p1198_p3, %p1197_p2 }
  0x2a   :  { %p1200_p5 = pnand %p1199_p4, %p1193_p1 }
  0x2c   :  { %1203 = shalt.err (!%p1200_p5)
}
  0x2d   :  { %53 = dma.hbm_to_vmem [thread:$0]  %s1367_s3, 4096, %s48_s26, [#allocation6], %s1253_s12, %s1253_s12, %s1254_s13  }
  0x2e   :  { %s1212_s0 = scalar_lea.vmem %s76_s28, 2048  ;;  %p1217_p7 = scmp.lt.s32.totalorder %s76_s28, %s76_s28 }
  0x2f   :  { %p1213_p6 = scmp.ne.s32.totalorder %s76_s28, %s1212_s0  ;;  %p1218_p8 = scmp.lt.s32.totalorder %s1212_s0, %s1212_s0 }
  0x31   :  { %p1219_p9 = por %p1218_p8, %p1217_p7 }
  0x33   :  { %p1220_p10 = pnand %p1219_p9, %p1213_p6 }
  0x35   :  { %1223 = shalt.err (!%p1220_p10)
}
  0x36   :  { %s1259_s10 = smov 64   ;;  %s1260_s11 = smov 4  }
  0x37   :  { %81 = dma.hbm_to_vmem [thread:$0]  %s1371_s7, 2048, %s76_s28, [#allocation9], %s1259_s10, %s1259_s10, %s1260_s11  }
  0x38   :  { %1244 = dma.done.wait [#allocation3], 64  }
  0x39   :  { %1245 = vsyncadd [#allocation3], 4294967232 }
  0x3a   :  { %1246 = dma.done.wait [#allocation6], 4608  }
  0x3b   :  { %1247 = vsyncadd [#allocation6], 4294962688 }
  0x3c   :  { %1248 = dma.done.wait [#allocation9], 6144  }
  0x3d   :  { %1249 = vsyncadd [#allocation9], 4294961152  ;;  %v1261_v0 = vmov 0   ;;  %v1004_v1 = vld [vmem:[#allocation5 + $0x14] ss:$8 sps:$4 sm:$0xff]   ;;  %vm137_vm0 = vcmask 261120  }
  0x3e   :  { %173 = vmatprep.mubr.bf16.mxu0 %v1261_v0  ;;  %v1006_v2 = vld [vmem:[#allocation5 + $0x10] ss:$8 sps:$4 sm:$0xff]   ;;  %153 = vmatprep.subr.bf16.mxu0 %v1004_v1  ;;  %v1007_v3 = vld [vmem:[#allocation5 + $0x4] ss:$8 sps:$4 sm:$0xff]   ;;  %v1009_v4 = vld [vmem:[#allocation5] ss:$8 sps:$4 sm:$0xff]  }
  0x3f   :  { %154 = vmatpush1.bf16.msra.mxu0 %v1006_v2  ;;  %v1010_v5 = vld [vmem:[#allocation7 + $0x74] ss:$8 sps:$4 sm:$0xff]   ;;  %v1012_v6 = vld [vmem:[#allocation7 + $0x70] ss:$8 sps:$4 sm:$0xff]   ;;  %v1013_v7 = vld [vmem:[#allocation7 + $0x64] ss:$8 sps:$4 sm:$0xff]   ;;  %v107_v2 = vlaneseq }
  0x40   :  { %155 = vmatprep.subr.bf16.mxu0 %v1007_v3  ;;  %390 = vmatprep.subr.bf16.mxu1 %v1010_v5  ;;  %v100_v8 = vld [vmem:[#allocation2] sm:$0xf]  ;;  %v1015_v9 = vld [vmem:[#allocation7 + $0x60] ss:$8 sps:$4 sm:$0xff]   ;;  %v1018_v11 = vld [vmem:[#allocation7 + $0x50] ss:$8 sps:$4 sm:$0xff]  }
  0x41   :  { %391 = vmatpush1.bf16.msra.mxu1 %v1012_v6  ;;  %v1016_v10 = vld [vmem:[#allocation7 + $0x54] ss:$8 sps:$4 sm:$0xff]   ;;  %v1019_v12 = vld [vmem:[#allocation7 + $0x44] ss:$8 sps:$4 sm:$0xff]   ;;  %v1021_v13 = vld [vmem:[#allocation7 + $0x40] ss:$8 sps:$4 sm:$0xff]  }
  0x42   :  { %392 = vmatprep.subr.bf16.mxu1 %v1013_v7  ;;  %v1022_v14 = vld [vmem:[#allocation7 + $0x34] ss:$8 sps:$4 sm:$0xff]   ;;  %v1024_v15 = vld [vmem:[#allocation7 + $0x30] ss:$8 sps:$4 sm:$0xff]   ;;  %v1025_v16 = vld [vmem:[#allocation7 + $0x24] ss:$8 sps:$4 sm:$0xff]  }
  0x43   :  { %156 = vmatpush1.bf16.msra.mxu0 %v1009_v4  ;;  %v1027_v17 = vld [vmem:[#allocation7 + $0x20] ss:$8 sps:$4 sm:$0xff]   ;;  %v1028_v18 = vld [vmem:[#allocation7 + $0x14] ss:$8 sps:$4 sm:$0xff]   ;;  %v1030_v19 = vld [vmem:[#allocation7 + $0x10] ss:$8 sps:$4 sm:$0xff]  }
  0x44   :  { %v1031_v20 = vld [vmem:[#allocation7 + $0x4] ss:$8 sps:$4 sm:$0xff]   ;;  %v1033_v21 = vld [vmem:[#allocation7] ss:$8 sps:$4 sm:$0xff]   ;;  %v1034_v22 = vld [vmem:[#allocation7 + $0xf4] ss:$8 sps:$4 sm:$0xff]  }
  0x45   :  { %393 = vmatpush1.bf16.msra.mxu1 %v1015_v9  ;;  %v1036_v23 = vld [vmem:[#allocation7 + $0xf0] ss:$8 sps:$4 sm:$0xff]   ;;  %v1037_v24 = vld [vmem:[#allocation7 + $0xe4] ss:$8 sps:$4 sm:$0xff]   ;;  %v1039_v25 = vld [vmem:[#allocation7 + $0xe0] ss:$8 sps:$4 sm:$0xff]  }
  0x46   :  { %889 = vmatmul.mubr.msk.bf16.vlgmr.msra.gmra.mxu0 %vm137_vm0, %v100_v8  ;;  %394 = vmatprep.subr.bf16.mxu1 %v1016_v10  ;;  %v1040_v26 = vld [vmem:[#allocation7 + $0xd4] ss:$8 sps:$4 sm:$0xff]   ;;  %v1042_v27 = vld [vmem:[#allocation7 + $0xd0] ss:$8 sps:$4 sm:$0xff]   ;;  %v1043_v28 = vld [vmem:[#allocation7 + $0xc4] ss:$8 sps:$4 sm:$0xff]  }
  0x47   :  { %v1045_v29 = vld [vmem:[#allocation7 + $0xc0] ss:$8 sps:$4 sm:$0xff]   ;;  %v1046_v30 = vld [vmem:[#allocation7 + $0xb4] ss:$8 sps:$4 sm:$0xff]   ;;  %v1048_v31 = vld [vmem:[#allocation7 + $0xb0] ss:$8 sps:$4 sm:$0xff]  }
  0x48   :  { %v1049_v32 = vld [vmem:[#allocation7 + $0xa4] ss:$8 sps:$4 sm:$0xff]   ;;  %v1051_v33 = vld [vmem:[#allocation7 + $0xa0] ss:$8 sps:$4 sm:$0xff]   ;;  %v1052_v34 = vld [vmem:[#allocation7 + $0x94] ss:$8 sps:$4 sm:$0xff]  }
  0x49   :  { %395 = vmatpush1.bf16.msra.mxu1 %v1018_v11  ;;  %v1054_v35 = vld [vmem:[#allocation7 + $0x90] ss:$8 sps:$4 sm:$0xff]   ;;  %v1055_v36 = vld [vmem:[#allocation7 + $0x84] ss:$8 sps:$4 sm:$0xff]   ;;  %v1057_v37 = vld [vmem:[#allocation7 + $0x80] ss:$8 sps:$4 sm:$0xff]  }
  0x4a   :  { %396 = vmatprep.subr.bf16.mxu1 %v1019_v12  ;;  %v1058_v38 = vld [vmem:[#allocation8 + $0x70] ss:$8 sps:$4 sm:$0xff]   ;;  %v1060_v39 = vld [vmem:[#allocation8 + $0x74] ss:$8 sps:$4 sm:$0xff]   ;;  %v1063_v40 = vld [vmem:[#allocation8 + $0x64] ss:$8 sps:$4 sm:$0xff]  }
  0x4b   :  { %639 = vmatprep.subr.bf16.mxu0 %v1060_v39  ;;  %v1061_v41 = vld [vmem:[#allocation8 + $0x60] ss:$8 sps:$4 sm:$0xff]   ;;  %v1066_v42 = vld [vmem:[#allocation8 + $0x54] ss:$8 sps:$4 sm:$0xff]   ;;  %v1064_v43 = vld [vmem:[#allocation8 + $0x50] ss:$8 sps:$4 sm:$0xff]  }
  0x4c   :  { %640 = vmatpush1.bf16.msra.mxu0 %v1058_v38  ;;  %v1069_v44 = vld [vmem:[#allocation8 + $0x44] ss:$8 sps:$4 sm:$0xff]   ;;  %v1067_v45 = vld [vmem:[#allocation8 + $0x40] ss:$8 sps:$4 sm:$0xff]   ;;  %v1072_v46 = vld [vmem:[#allocation8 + $0x34] ss:$8 sps:$4 sm:$0xff]  }
  0x4d   :  { %397 = vmatpush1.bf16.msra.mxu1 %v1021_v13  ;;  %641 = vmatprep.subr.bf16.mxu0 %v1063_v40  ;;  %v1070_v47 = vld [vmem:[#allocation8 + $0x30] ss:$8 sps:$4 sm:$0xff]   ;;  %v1075_v48 = vld [vmem:[#allocation8 + $0x24] ss:$8 sps:$4 sm:$0xff]   ;;  %v1073_v49 = vld [vmem:[#allocation8 + $0x20] ss:$8 sps:$4 sm:$0xff]  }
  0x4e   :  { %398 = vmatprep.subr.bf16.mxu1 %v1022_v14  ;;  %v1078_v50 = vld [vmem:[#allocation8 + $0x14] ss:$8 sps:$4 sm:$0xff]   ;;  %v1076_v51 = vld [vmem:[#allocation8 + $0x10] ss:$8 sps:$4 sm:$0xff]   ;;  %v1081_v52 = vld [vmem:[#allocation8 + $0x4] ss:$8 sps:$4 sm:$0xff]  }
  0x4f   :  { %v1079_v53 = vld [vmem:[#allocation8] ss:$8 sps:$4 sm:$0xff]   ;;  %v1084_v54 = vld [vmem:[#allocation8 + $0xf4] ss:$8 sps:$4 sm:$0xff]   ;;  %v1082_v55 = vld [vmem:[#allocation8 + $0xf0] ss:$8 sps:$4 sm:$0xff]  }
  0x50   :  { %642 = vmatpush1.bf16.msra.mxu0 %v1061_v41  ;;  %v1087_v56 = vld [vmem:[#allocation8 + $0xe4] ss:$8 sps:$4 sm:$0xff]   ;;  %v1085_v57 = vld [vmem:[#allocation8 + $0xe0] ss:$8 sps:$4 sm:$0xff]   ;;  %v1090_v58 = vld [vmem:[#allocation8 + $0xd4] ss:$8 sps:$4 sm:$0xff]  }
  0x51   :  { %399 = vmatpush1.bf16.msra.mxu1 %v1024_v15  ;;  %643 = vmatprep.subr.bf16.mxu0 %v1066_v42  ;;  %v1088_v59 = vld [vmem:[#allocation8 + $0xd0] ss:$8 sps:$4 sm:$0xff]   ;;  %v1093_v60 = vld [vmem:[#allocation8 + $0xc4] ss:$8 sps:$4 sm:$0xff]   ;;  %v1091_v61 = vld [vmem:[#allocation8 + $0xc0] ss:$8 sps:$4 sm:$0xff]  }
  0x52   :  { %400 = vmatprep.subr.bf16.mxu1 %v1025_v16  ;;  %v1096_v62 = vld [vmem:[#allocation8 + $0xb4] ss:$8 sps:$4 sm:$0xff]   ;;  %v1094_v63 = vld [vmem:[#allocation8 + $0xb0] ss:$8 sps:$4 sm:$0xff]   ;;  %v1099_v0 = vld [vmem:[#allocation8 + $0xa4] ss:$8 sps:$4 sm:$0xff]  }
  0x53   :  { %v1097_v1 = vld [vmem:[#allocation8 + $0xa0] ss:$8 sps:$4 sm:$0xff]   ;;  %v108_v3 = vshrl.u32 %v107_v2, 7  ;;  %v105_v5 = vld [vmem:[%s1366_s2] sm:$0x3] }
  0x54   :  { %644 = vmatpush1.bf16.msra.mxu0 %v1064_v43 }
  0x55   :  { %401 = vmatpush1.bf16.msra.mxu1 %v1027_v17  ;;  %645 = vmatprep.subr.bf16.mxu0 %v1069_v44  ;;  %v1338_v4 = vsub.s32 0, %v108_v3  ;;  %v1343_v6 = vsub.s32 1, %v108_v3  ;;  %v954_v3 = vld [vmem:[%s1372_s8] ss:$0 sm:$0xff] }
  0x56   :  { %402 = vmatprep.subr.bf16.mxu1 %v1028_v18 }
  0x57   :  { %v110_v7 = vrot.slane %v105_v5, %v1338_v4  ;;  %v114_v8 = vrot.slane %v105_v5, %v1343_v6 }
  0x58   :  { %646 = vmatpush1.bf16.msra.mxu0 %v1067_v45 }
  0x59   :  { %403 = vmatpush1.bf16.msra.mxu1 %v1030_v19  ;;  %647 = vmatprep.subr.bf16.mxu0 %v1072_v46  ;;  %v1102_v19 = vld [vmem:[#allocation8 + $0x94] ss:$8 sps:$4 sm:$0xff]  }
  0x5a   :  { %404 = vmatprep.subr.bf16.mxu1 %v1031_v20  ;;  %v1100_v20 = vld [vmem:[#allocation8 + $0x90] ss:$8 sps:$4 sm:$0xff]  }
  0x5c   :  { %648 = vmatpush1.bf16.msra.mxu0 %v1070_v47 }
  0x5d   :  { %405 = vmatpush1.bf16.msra.mxu1 %v1033_v21  ;;  %649 = vmatprep.subr.bf16.mxu0 %v1075_v48  ;;  %v1105_v21 = vld [vmem:[#allocation8 + $0x84] ss:$8 sps:$4 sm:$0xff]  }
  0x5e   :  { %406 = vmatprep.subr.bf16.mxu1 %v1034_v22  ;;  %v1103_v22 = vld [vmem:[#allocation8 + $0x80] ss:$8 sps:$4 sm:$0xff]  }
  0x5f   :  { %v1118_v48 = vld [vmem:[#allocation10 + $0x48] sm:$0xff]  }
  0x60   :  { %650 = vmatpush1.bf16.msra.mxu0 %v1073_v49  ;;  %v1119_v49 = vld [vmem:[#allocation10 + $0x8] sm:$0xff]  }
  0x61   :  { %407 = vmatpush2.bf16.msra.mxu1 %v1036_v23  ;;  %651 = vmatprep.subr.bf16.mxu0 %v1078_v50  ;;  %v1106_v23 = vld [vmem:[#allocation10 + $0x78] sm:$0xff]   ;;  %v1120_v50 = vld [vmem:[#allocation10 + $0x40] sm:$0xff]  }
  0x62   :  { %408 = vmatprep.subr.bf16.mxu1 %v1037_v24  ;;  %v1107_v24 = vld [vmem:[#allocation10 + $0x38] sm:$0xff]  }
  0x64   :  { %652 = vmatpush1.bf16.msra.mxu0 %v1076_v51  ;;  %v1121_v51 = vld [vmem:[#allocation10] sm:$0xff]  }
  0x65   :  { %409 = vmatpush2.bf16.msra.mxu1 %v1039_v25  ;;  %653 = vmatprep.subr.bf16.mxu0 %v1081_v52  ;;  %v1108_v25 = vld [vmem:[#allocation10 + $0x70] sm:$0xff]   ;;  %v467_v52 = vld [vmem:[%s1370_s6] sm:$0x3]  ;;  %s1262_s6 = smov [#allocation11]  }
  0x66   :  { %410 = vmatprep.subr.bf16.mxu1 %v1040_v26  ;;  %v1109_v26 = vld [vmem:[#allocation10 + $0x30] sm:$0xff]   ;;  %s874_s18 = sshll.u32 %s1262_s6, 4  ;;  %s875_s18 = int_to_ptr.vmem [resolvable:$true] %s874_s18 }
  0x67   :  { %s1224_s19 = scalar_lea.vmem %s875_s18, 128  ;;  %p1229_p12 = scmp.lt.s32.totalorder %s875_s18, %s875_s18 }
  0x68   :  { %654 = vmatpush1.bf16.msra.mxu0 %v1079_v53  ;;  %v472_v53 = vrot.slane %v467_v52, %v1338_v4  ;;  %p1225_p11 = scmp.ne.s32.totalorder %s875_s18, %s1224_s19  ;;  %p1230_p13 = scmp.lt.s32.totalorder %s1224_s19, %s1224_s19 }
  0x69   :  { %411 = vmatpush2.bf16.msra.mxu1 %v1042_v27  ;;  %655 = vmatprep.subr.bf16.mxu0 %v1084_v54  ;;  %v1110_v27 = vld [vmem:[#allocation10 + $0x68] sm:$0xff]   ;;  %v476_v54 = vrot.slane %v467_v52, %v1343_v6 }
  0x6a   :  { %412 = vmatprep.subr.bf16.mxu1 %v1043_v28  ;;  %v1111_v28 = vld [vmem:[#allocation10 + $0x28] sm:$0xff]   ;;  %p1231_p0 = por %p1230_p13, %p1229_p12 }
  0x6c   :  { %656 = vmatpush2.bf16.msra.mxu0 %v1082_v55  ;;  %p1232_p1 = pnand %p1231_p0, %p1225_p11 }
  0x6d   :  { %413 = vmatpush2.bf16.msra.mxu1 %v1045_v29  ;;  %657 = vmatprep.subr.bf16.mxu0 %v1087_v56  ;;  %v1112_v29 = vld [vmem:[#allocation10 + $0x60] sm:$0xff]  }
  0x6e   :  { %414 = vmatprep.subr.bf16.mxu1 %v1046_v30  ;;  %v1113_v30 = vld [vmem:[#allocation10 + $0x20] sm:$0xff]  }
  0x70   :  { %658 = vmatpush2.bf16.msra.mxu0 %v1085_v57 }
  0x71   :  { %415 = vmatpush2.bf16.msra.mxu1 %v1048_v31  ;;  %659 = vmatprep.subr.bf16.mxu0 %v1090_v58  ;;  %v1114_v31 = vld [vmem:[#allocation10 + $0x58] sm:$0xff]  }
  0x72   :  { %416 = vmatprep.subr.bf16.mxu1 %v1049_v32  ;;  %v1115_v32 = vld [vmem:[#allocation10 + $0x18] sm:$0xff]  }
  0x74   :  { %660 = vmatpush2.bf16.msra.mxu0 %v1088_v59 }
  0x75   :  { %417 = vmatpush2.bf16.msra.mxu1 %v1051_v33  ;;  %661 = vmatprep.subr.bf16.mxu0 %v1093_v60  ;;  %v1116_v33 = vld [vmem:[#allocation10 + $0x50] sm:$0xff]  }
  0x76   :  { %418 = vmatprep.subr.bf16.mxu1 %v1052_v34  ;;  %v1117_v34 = vld [vmem:[#allocation10 + $0x10] sm:$0xff]  }
  0x78   :  { %662 = vmatpush2.bf16.msra.mxu0 %v1091_v61 }
  0x79   :  { %419 = vmatpush2.bf16.msra.mxu1 %v1054_v35  ;;  %663 = vmatprep.subr.bf16.mxu0 %v1096_v62  ;;  %v218_v35 = vld [vmem:[%s1368_s4] sm:$0x3] }
  0x7a   :  { %420 = vmatprep.subr.bf16.mxu1 %v1055_v36  ;;  %v223_v36 = vrot.slane %v218_v35, %v1338_v4 }
  0x7c   :  { %664 = vmatpush2.bf16.msra.mxu0 %v1094_v63 }
  0x7d   :  { %421 = vmatpush2.bf16.msra.mxu1 %v1057_v37  ;;  %665 = vmatprep.subr.bf16.mxu0 %v1099_v0  ;;  %v227_v37 = vrot.slane %v218_v35, %v1343_v6 }
  0x7e   :  { %971 = vmatprep.subr.bf16.mxu1 %v1106_v23 }
  0x80   :  { %666 = vmatpush2.bf16.msra.mxu0 %v1097_v1 }
  0x81   :  { %667 = vmatprep.subr.bf16.mxu0 %v1102_v19 }
  0x84   :  { %668 = vmatpush2.bf16.msra.mxu0 %v1100_v20 }
  0x85   :  { %669 = vmatprep.subr.bf16.mxu0 %v1105_v21 }
  0x88   :  { %670 = vmatpush2.bf16.msra.mxu0 %v1103_v22 }
 0x106   :  { %v175_v9 = vpop.f32.mrf.mxu0 }
 0x107   :  { %v176_v10 = vadd.f32 %v175_v9, %v110_v7 }
 0x108   :  { %v177_v11 = vpop.f32.mrf.mxu0 }
 0x109   :  { %v178_v12 = vadd.f32 %v177_v11, %v114_v8  ;;  %v182_v13 = vmax.f32 %v176_v10, 0.0  ;;  %v860_v10 = vand.u32 127, %v107_v2 }
 0x10a   :  { %v179_v14 = vpop.f32.mrf.mxu0 }
 0x10b   :  { %v183_v15 = vmax.f32 %v178_v12, 0.0  ;;  %v184_v18 = vpack.c.bf16 %v182_v13, %v182_v13  ;;  %vm865_vm1 = vcmp.ge.s32.totalorder %v860_v10, 64 }
 0x10c   :  { %v180_v16 = vpop.f32.mrf.mxu0 }
 0x10d   :  { %v185_v17 = vpack.c.bf16 %v183_v15, %v183_v15 }
 0x10f   :  { %422 = vmatprep.mubr.bf16.mxu1 %v185_v17 }
 0x110   :  { %423 = vmatmul.mubr.bf16.vlgmr.msra.gmra.mxu1 %v184_v18 }
 0x111   :  { %972 = vmatpush3.bf16.msra.mxu1 %v1107_v24 }
 0x112   :  { %973 = vmatprep.subr.bf16.mxu1 %v1108_v25 }
 0x115   :  { %974 = vmatpush3.bf16.msra.mxu1 %v1109_v26 }
 0x116   :  { %975 = vmatprep.subr.bf16.mxu1 %v1110_v27 }
 0x119   :  { %976 = vmatpush3.bf16.msra.mxu1 %v1111_v28 }
 0x11a   :  { %977 = vmatprep.subr.bf16.mxu1 %v1112_v29 }
 0x11d   :  { %978 = vmatpush3.bf16.msra.mxu1 %v1113_v30 }
 0x11e   :  { %979 = vmatprep.subr.bf16.mxu1 %v1114_v31 }
 0x121   :  { %980 = vmatpush3.bf16.msra.mxu1 %v1115_v32 }
 0x122   :  { %981 = vmatprep.subr.bf16.mxu1 %v1116_v33 }
 0x125   :  { %982 = vmatpush3.bf16.msra.mxu1 %v1117_v34 }
 0x126   :  { %983 = vmatprep.subr.bf16.mxu1 %v1118_v48 }
 0x129   :  { %984 = vmatpush3.bf16.msra.mxu1 %v1119_v49 }
 0x12a   :  { %985 = vmatprep.subr.bf16.mxu1 %v1120_v50 }
 0x12d   :  { %986 = vmatpush3.bf16.msra.mxu1 %v1121_v51 }
 0x1d0   :  { %v424_v38 = vpop.f32.mrf.mxu1 }
 0x1d1   :  { %v425_v39 = vadd.f32 %v424_v38, %v223_v36 }
 0x1d2   :  { %v426_v40 = vpop.f32.mrf.mxu1 }
 0x1d3   :  { %v427_v41 = vadd.f32 %v426_v40, %v227_v37  ;;  %v431_v42 = vmax.f32 %v425_v39, 0.0 }
 0x1d4   :  { %v428_v43 = vpop.f32.mrf.mxu1 }
 0x1d5   :  { %v432_v44 = vmax.f32 %v427_v41, 0.0  ;;  %v433_v47 = vpack.c.bf16 %v431_v42, %v431_v42 }
 0x1d6   :  { %v429_v45 = vpop.f32.mrf.mxu1 }
 0x1d7   :  { %v434_v46 = vpack.c.bf16 %v432_v44, %v432_v44 }
 0x1d9   :  { %671 = vmatprep.mubr.bf16.mxu0 %v434_v46 }
 0x1da   :  { %672 = vmatmul.mubr.bf16.vlgmr.msra.gmra.mxu0 %v433_v47 }
 0x29a   :  { %v673_v55 = vpop.f32.mrf.mxu0 }
 0x29b   :  { %v674_v56 = vadd.f32 %v673_v55, %v472_v53 }
 0x29c   :  { %v675_v57 = vpop.f32.mrf.mxu0 }
 0x29d   :  { %v676_v58 = vadd.f32 %v675_v57, %v476_v54  ;;  %v680_v59 = vmax.f32 %v674_v56, 0.0 }
 0x29e   :  { %v677_v60 = vpop.f32.mrf.mxu0 }
 0x29f   :  { %v681_v61 = vmax.f32 %v676_v58, 0.0  ;;  %v682_v0 = vpack.c.bf16 %v680_v59, %v680_v59 }
 0x2a0   :  { %v678_v62 = vpop.f32.mrf.mxu0 }
 0x2a1   :  { %v683_v63 = vpack.c.bf16 %v681_v61, %v681_v61 }
 0x2a3   :  { %851 = vmatprep.mubr.bf16.mxu1 %v683_v63 }
 0x2a4   :  { %852 = vmatmul.mubr.bf16.vlgmr.msra.gmra.mxu1 %v682_v0 }
 0x364   :  { %v987_v1 = vpop.f32.mrf.mxu1 }
 0x366   :  { %v988_v4 = vpop.f32.mrf.mxu1 }
 0x367   :  { %v989_v5 = vadd.f32 %v988_v4, %v987_v1 }
 0x368   :  { %v990_v6 = vpop.f32.mrf.mxu1 }
 0x369   :  { %v854_v7 = vadd.f32 %v989_v5, %v954_v3 }
 0x36a   :  { %v991_v8 = vpop.f32.mrf.mxu1 }
 0x36b   :  { %1122 = vtanh.f32 %v854_v7 }
 0x378   :  { %v1123_v9 = vpop.eup %1122 }
 0x379   :  { %v862_v11 = vadd.f32 1.0, %v1123_v9 }
 0x37b   :  { %v863_v12 = vmul.f32 3.5, %v862_v11 }
 0x37d   :  { %v864_v13 = vadd.f32 -5.0, %v863_v12 }
 0x37f   :  { %v866_v14 = vsel %vm865_vm1, %v864_v13, %v854_v7 }
 0x380   :  { %867 = vst [vmem:[#allocation11] sm:$0xff] %v866_v14 }
 0x381   :  { %1235 = shalt.err (!%p1232_p1)
}
 0x382   :  { %877 = dma.vmem_to_hbm [thread:$0]  %s875_s18, 128, %s1373_s9, [#allocation4]  }
 0x383   :  { %1250 = dma.done.wait [#allocation4], 128  }
 0x384   :  { %1251 = vsyncadd [#allocation4], 4294967168 }
 0x385   :  { %881 = vsyncpa [#allocation3], 1 }
 0x386   :  { %882 = vsyncpa [#allocation6], 1 }
 0x387   :  { %883 = vsyncpa [#allocation9], 1 }
 0x388   :  { %884 = vsyncpa [#allocation4], 1 }

</bundles_post_ra>
